<compile_context>
chip_gen: v5e
topology: v5e:2x2
jax: 0.10.0
libtpu: 0.0.40
codegen_flags: <defaults>
</compile_context>

<pallas_src>
import functools

import jax
import jax.numpy as jnp
from jax import lax
from jax.experimental import pallas as pl
from jax.experimental.pallas import tpu as pltpu

LANE = 128
NEG_BIG = -1e30  # large finite negative; safer than -inf for masked scores


def _round_up(n, m):
    return (n + m - 1) // m * m


def _pick_tile(n, candidates):
    for c in candidates:
        if c <= n and n % c == 0:
            return c
    return n  # fall back to the full (untiled) extent


# --------------------------- fused QKV projection ---------------------------

def _qkv_proj_kernel(x_ref, w_ref, b_ref, o_ref, *, mxu_dtype):
    # x: (tm, C), w: (C, 3*Hp), b: (1, 3*Hp) -> o: (tm, 3*Hp)
    x = x_ref[...].astype(mxu_dtype)
    w = w_ref[...].astype(mxu_dtype)
    acc = jnp.dot(x, w, preferred_element_type=jnp.float32)
    o_ref[...] = (acc + b_ref[...]).astype(o_ref.dtype)


def _qkv_projection(x2d, w_qkv, b_qkv, out_dtype, mxu_dtype):
    BT, C = x2d.shape
    N3 = w_qkv.shape[1]
    tm = _pick_tile(BT, (512, 256, 128, 64, 32, 16, 8))
    cost = pl.CostEstimate(
        flops=int(2 * BT * C * N3),
        transcendentals=0,
        bytes_accessed=int(4 * (BT * C + C * N3 + N3)
                           + BT * N3 * jnp.dtype(out_dtype).itemsize),
    )
    kernel = functools.partial(_qkv_proj_kernel, mxu_dtype=mxu_dtype)
    return pl.pallas_call(
        kernel,
        out_shape=jax.ShapeDtypeStruct((BT, N3), out_dtype),
        grid_spec=pltpu.PrefetchScalarGridSpec(
            num_scalar_prefetch=0,
            grid=(BT // tm,),
            in_specs=[
                pl.BlockSpec((tm, C), lambda i: (i, 0)),
                pl.BlockSpec((C, N3), lambda i: (0, 0)),
                pl.BlockSpec((1, N3), lambda i: (0, 0)),
            ],
            out_specs=pl.BlockSpec((tm, N3), lambda i: (i, 0)),
        ),
        compiler_params=pltpu.CompilerParams(
            dimension_semantics=("parallel",),
            vmem_limit_bytes=32 * 1024 * 1024,
        ),
        cost_estimate=cost,
    )(x2d, w_qkv, b_qkv)


# --------------------------- flash causal attention --------------------------

def _flash_attn_kernel(q_ref, k_ref, v_ref, o_ref, m_sc, l_sc, acc_sc):
    qi = pl.program_id(1)
    ki = pl.program_id(2)
    nk = pl.num_programs(2)

    @pl.when(ki == 0)
    def _init():
        m_sc[...] = jnp.full(m_sc.shape, NEG_BIG, jnp.float32)
        l_sc[...] = jnp.zeros(l_sc.shape, jnp.float32)
        acc_sc[...] = jnp.zeros(acc_sc.shape, jnp.float32)

    def _step(apply_mask):
        q = q_ref[0]                                     # (tq, Hp), f32 or bf16
        k = k_ref[0]                                     # (tk, Hp)
        # q @ k^T without materializing a transposed copy of k.  The softmax
        # scale is already folded into q (via Wq/bq) in the wrapper.
        s = lax.dot_general(q, k, (((1,), (1,)), ((), ())),
                            preferred_element_type=jnp.float32)   # (tq, tk)
        if apply_mask:
            # Diagonal-straddling tile only (tq == tk, so q/k offsets match):
            # local iotas are enough for the causal mask.
            rows = lax.broadcasted_iota(jnp.int32, s.shape, 0)
            cols = lax.broadcasted_iota(jnp.int32, s.shape, 1)
            s = jnp.where(rows >= cols, s, NEG_BIG)

        m_prev = m_sc[...]
        m_new = jnp.maximum(m_prev, jnp.max(s, axis=-1, keepdims=True))
        alpha = jnp.exp(m_prev - m_new)
        # TODO(synk): on v6e/v7x a bf16 exp (p = exp((s - m_new).astype(bf16)))
        # roughly doubles EUP throughput; kept f32 here so v5e is not deoptimized.
        p = jnp.exp(s - m_new)                           # f32 softmax math
        l_sc[...] = alpha * l_sc[...] + jnp.sum(p, axis=-1, keepdims=True)
        acc_sc[...] = alpha * acc_sc[...] + jnp.dot(
            p.astype(v_ref.dtype), v_ref[0], preferred_element_type=jnp.float32)
        m_sc[...] = m_new

    @pl.when(ki == qi)       # diagonal tile: causal mask needed
    def _diag():
        _step(True)

    @pl.when(ki < qi)        # fully below the diagonal: no mask ops at all
    def _below():
        _step(False)

    # ki > qi tiles are fully above the diagonal: no compute, and the k/v
    # index maps clamp the block index so no DMA is issued for them either.

    @pl.when(ki == nk - 1)
    def _finalize():
        # Runs once per q tile -> exact reciprocal is essentially free.
        inv_l = pl.reciprocal(l_sc[...], approx=False)
        o_ref[0] = (acc_sc[...] * inv_l).astype(o_ref.dtype)


# --------------------------------- wrapper -----------------------------------

def attention_head(x, wq, wk, wv, bq, bk, bv, *, mxu_dtype=jnp.float32,
                   tile=None):
    """Single causal self-attention head (eval mode, dropout = identity).

    x:  (B, T, C) float32; w*: (H, C) PyTorch nn.Linear weights; b*: (H,).
    Returns (B, T, H) in x.dtype.  mxu_dtype=jnp.bfloat16 stores QKV in bf16
    and feeds bf16 operands to the MXU (f32 accumulation, f32 softmax).
    """
    B, T, C = x.shape
    H = wq.shape[0]
    Hp = _round_up(H, LANE)  # lane-dense head dim (pad to a multiple of 128)
    # PyTorch uses x.shape[-1]**-0.5 (n_embed, not head_size) -- kept on purpose.
    scale = float(C) ** -0.5

    # ---- glue: fused, lane-padded QKV weights/biases (zero pad is exact) ----
    def pad_w(w, s=1.0):      # (H, C) -> (C, Hp)
        return jnp.pad((w * s).T, ((0, 0), (0, Hp - H)))

    def pad_b(b, s=1.0):      # (H,) -> (Hp,)
        return jnp.pad(b * s, (0, Hp - H))

    # Softmax scale folded into W_Q / b_Q at trace time (removes a (tq,tk)
    # VPU multiply from every kv step).
    w_qkv = jnp.concatenate([pad_w(wq, scale), pad_w(wk), pad_w(wv)], axis=1)
    b_qkv = jnp.concatenate([pad_b(bq, scale), pad_b(bk), pad_b(bv)])[None, :]

    bf16 = jnp.dtype(mxu_dtype) == jnp.dtype(jnp.bfloat16)
    qkv_dtype = jnp.bfloat16 if bf16 else x.dtype

    # ---- kernel 1: fused QKV projection over all B*T rows (fills MXU M) ----
    qkv = _qkv_projection(x.reshape(B * T, C), w_qkv, b_qkv, qkv_dtype,
                          mxu_dtype)
    qkv = qkv.reshape(B, T, 3 * Hp)

    # ---- kernel 2: flash-tiled causal attention ----
    # Prefer big tiles (per-step overhead ~0.35 us; 512 hits ~85% of HBM
    # roofline on v6e).  VMEM at tq=tk=512, Hp=128 is ~2-3 MiB with double
    # buffering -> well under the 32 MiB limit on every generation (incl. v7x).
    if tile is None:
        tile = _pick_tile(T, (512, 256, 128, 64, 32, 16, 8))
    assert T % tile == 0, "tile must divide T"
    tq = tk = tile
    nq = T // tq
    grid = (B, nq, T // tk)

    itemsize = jnp.dtype(qkv_dtype).itemsize
    kv_tiles = nq * (nq + 1) // 2          # causal: only lower-triangular tiles
    cost = pl.CostEstimate(
        flops=int(2 * B * T * T * Hp),      # ~half of dense 4*B*T*T*Hp (causal)
        transcendentals=int(B * T * T // 2),
        bytes_accessed=int(
            B * T * Hp * itemsize                     # q reads
            + 2 * B * kv_tiles * tk * Hp * itemsize   # k and v re-reads (causal)
            + B * T * Hp * 4),                        # f32 output writes
    )

    out_padded = pl.pallas_call(
        _flash_attn_kernel,
        out_shape=jax.ShapeDtypeStruct((B, T, Hp), x.dtype),
        grid_spec=pltpu.PrefetchScalarGridSpec(
            num_scalar_prefetch=0,
            grid=grid,
            in_specs=[
                # all three views read from the same fused (B, T, 3*Hp) array
                pl.BlockSpec((1, tq, Hp), lambda b, qi, ki: (b, qi, 0)),
                # clamp the kv block index: above-diagonal tiles repeat the
                # previous block index, so Pallas elides their DMA entirely.
                pl.BlockSpec((1, tk, Hp),
                             lambda b, qi, ki: (b, jnp.minimum(ki, qi), 1)),
                pl.BlockSpec((1, tk, Hp),
                             lambda b, qi, ki: (b, jnp.minimum(ki, qi), 2)),
            ],
            out_specs=pl.BlockSpec((1, tq, Hp), lambda b, qi, ki: (b, qi, 0)),
            scratch_shapes=[
                pltpu.VMEM((tq, 1), jnp.float32),    # running max
                pltpu.VMEM((tq, 1), jnp.float32),    # running sum
                pltpu.VMEM((tq, Hp), jnp.float32),   # output accumulator
            ],
        ),
        compiler_params=pltpu.CompilerParams(
            dimension_semantics=("parallel", "parallel", "arbitrary"),
            vmem_limit_bytes=32 * 1024 * 1024,
        ),
        cost_estimate=cost,
    )(qkv, qkv, qkv)

    # TODO(synk): nn.Dropout(0.1) on the attention weights is identity in eval
    # mode; a training-mode kernel would add pltpu.prng_seed + prng_random_bits.
    # TODO(synk): with H=16 padded to 128 lanes, fusing >=8 heads into one
    # kernel would turn the lane padding into real work (multi-head module).
    return out_padded[..., :H]


def attention_head_ref(x, wq, wk, wv, bq, bk, bv):
    """Pure-JAX reference mirroring the PyTorch forward (eval mode)."""
    B, T, C = x.shape
    q = x @ wq.T + bq
    k = x @ wk.T + bk
    v = x @ wv.T + bv
    wei = jnp.einsum("btc,bsc->bts", q, k) * (C ** -0.5)
    mask = jnp.tril(jnp.ones((T, T)))
    wei = jnp.where(mask == 0, -jnp.inf, wei)
    wei = jax.nn.softmax(wei, axis=-1)
    return wei @ v


if __name__ == "__main__":
    n_embed, head_size = 32, 16

    key = jax.random.PRNGKey(0)
    kx1, kx2, kwq, kwk, kwv, kbq, kbk, kbv = jax.random.split(key, 8)

    # PyTorch nn.Linear-style init: U(-1/sqrt(C), 1/sqrt(C))
    bound = 1.0 / (n_embed ** 0.5)

    def uni(k, shape):
        return jax.random.uniform(k, shape, jnp.float32, -bound, bound)

    wq = uni(kwq, (head_size, n_embed))
    wk = uni(kwk, (head_size, n_embed))
    wv = uni(kwv, (head_size, n_embed))
    bq = uni(kbq, (head_size,))
    bk = uni(kbk, (head_size,))
    bv = uni(kbv, (head_size,))

    # Case 1: module-default toy shape (B=2, T=8) -- single-tile path, f32.
    x1 = jax.random.normal(kx1, (2, 8, n_embed), dtype=jnp.float32)
    out1 = jax.block_until_ready(attention_head(x1, wq, wk, wv, bq, bk, bv))
    ref1 = attention_head_ref(x1, wq, wk, wv, bq, bk, bv)
    assert out1.shape == (2, 8, head_size)
    assert jnp.allclose(out1, ref1, atol=2e-3, rtol=2e-3), "mismatch (T=8, f32)"

    # Case 2: longer sequence with forced 128-tiles -- exercises the multi-tile
    # flash path: online softmax, causal kv-tile skip, and DMA-clamped index
    # maps (grid = (2, 2, 2)).
    x2 = jax.random.normal(kx2, (2, 256, n_embed), dtype=jnp.float32)
    out2 = jax.block_until_ready(
        attention_head(x2, wq, wk, wv, bq, bk, bv, tile=128))
    ref2 = attention_head_ref(x2, wq, wk, wv, bq, bk, bv)
    assert out2.shape == (2, 256, head_size)
    assert jnp.allclose(out2, ref2, atol=2e-3, rtol=2e-3), "mismatch (T=256, f32)"

    # Case 3: default (large) tile selection, f32 -- single big tile per batch.
    out2b = jax.block_until_ready(attention_head(x2, wq, wk, wv, bq, bk, bv))
    assert jnp.allclose(out2b, ref2, atol=2e-3, rtol=2e-3), "mismatch (big tile)"

    # Case 4: bf16 MXU operands + bf16 QKV storage (v5e/v6e/v7x fast path),
    # f32 accumulation/softmax, multi-tile path.
    out3 = jax.block_until_ready(
        attention_head(x2, wq, wk, wv, bq, bk, bv,
                       mxu_dtype=jnp.bfloat16, tile=128))
    assert jnp.allclose(out3, ref2, atol=3e-2, rtol=3e-2), "mismatch (bf16)"

    print("KERNEL_OK")
</pallas_src>

<mosaic_0001>
module attributes {stable_mosaic.version = 11 : i64} {
  func.func @_qkv_proj_kernel(%arg0: i32, %arg1: memref<16x32xf32, #tpu.memory_space<vmem>>, %arg2: memref<32x384xf32, #tpu.memory_space<vmem>>, %arg3: memref<1x384xf32, #tpu.memory_space<vmem>>, %arg4: memref<16x384xf32, #tpu.memory_space<vmem>>) attributes {dimension_semantics = [#tpu.dimension_semantics<parallel>], iteration_bounds = array<i64: 1>, scalar_prefetch = 0 : i64, scratch_operands = 0 : i64, tpu.core_type = #tpu.core_type<tc>, window_params = [{transform_indices = @transform_0, window_bounds = array<i64: 16, 32>}, {pipeline_mode = #tpu.pipeline_mode<synchronous>, transform_indices = @transform_1, window_bounds = array<i64: 32, 384>}, {pipeline_mode = #tpu.pipeline_mode<synchronous>, transform_indices = @transform_2, window_bounds = array<i64: 1, 384>}, {transform_indices = @transform_3, window_bounds = array<i64: 16, 384>}]} {
    %c0 = arith.constant 0 : index
    %c0_0 = arith.constant 0 : index
    %0 = vector.load %arg1[%c0, %c0_0] : memref<16x32xf32, #tpu.memory_space<vmem>>, vector<16x32xf32>
    %c0_1 = arith.constant 0 : index
    %c0_2 = arith.constant 0 : index
    %1 = vector.load %arg2[%c0_1, %c0_2] : memref<32x384xf32, #tpu.memory_space<vmem>>, vector<32x384xf32>
    %cst = arith.constant dense<0.000000e+00> : vector<16x384xf32>
    %2 = tpu.matmul %0, %1, %cst {dimension_numbers = #tpu.dot_dimension_numbers<[1], [0], [0], [1], [0, 0, 1, 1], [], []>} : vector<16x32xf32>, vector<32x384xf32>, vector<16x384xf32> -> vector<16x384xf32>
    %c0_3 = arith.constant 0 : index
    %c0_4 = arith.constant 0 : index
    %3 = vector.load %arg3[%c0_3, %c0_4] : memref<1x384xf32, #tpu.memory_space<vmem>>, vector<1x384xf32>
    %4 = vector.broadcast %3 : vector<1x384xf32> to vector<16x384xf32>
    %5 = arith.addf %2, %4 : vector<16x384xf32>
    %c0_5 = arith.constant 0 : index
    %c0_6 = arith.constant 0 : index
    %6 = vector.load %arg4[%c0_5, %c0_6] : memref<16x384xf32, #tpu.memory_space<vmem>>, vector<16x384xf32>
    tpu.vector_store %arg4[%c0_5, %c0_6], %5 {strides = array<i32>} : memref<16x384xf32, #tpu.memory_space<vmem>>, vector<16x384xf32>,
    return
  }
  func.func @transform_0(%arg0: i32) -> (i32, i32) {
    %c0_i32 = arith.constant 0 : i32
    %c0_i32_0 = arith.constant 0 : i32
    return %arg0, %c0_i32 : i32, i32
  }
  func.func @transform_1(%arg0: i32) -> (i32, i32) {
    %c0_i32 = arith.constant 0 : i32
    %c0_i32_0 = arith.constant 0 : i32
    %c0_i32_1 = arith.constant 0 : i32
    return %c0_i32, %c0_i32_0 : i32, i32
  }
  func.func @transform_2(%arg0: i32) -> (i32, i32) {
    %c0_i32 = arith.constant 0 : i32
    %c0_i32_0 = arith.constant 0 : i32
    %c0_i32_1 = arith.constant 0 : i32
    return %c0_i32, %c0_i32_0 : i32, i32
  }
  func.func @transform_3(%arg0: i32) -> (i32, i32) {
    %c0_i32 = arith.constant 0 : i32
    %c0_i32_0 = arith.constant 0 : i32
    return %arg0, %c0_i32 : i32, i32
  }
}

</mosaic_0001>

<bundles_post_ra>
// kernel: tpu_custom_call.1
= control target key start
LH: loop header
LB: loop body
LE: loop exit
PB: predicated region body
PF: predicated region fallthrough
CT: control target
= control target key end

     0   :  { %8 = vsyncpa [#allocation3], 0  ;;  %s356_s0 = inlined_call_operand.hbm [shape: f32[16,32], index: 0, kind: input, shape index: {}]   ;;  %s357_s1 = inlined_call_operand.hbm [shape: f32[32,384], index: 1, kind: input, shape index: {}]   ;;  %s358_s2 = inlined_call_operand.hbm [shape: f32[1,384], index: 2, kind: input, shape index: {}]   ;;  %s359_s3 = inlined_call_operand.hbm [shape: f32[16,384], index: 3, kind: output, shape index: {}]  }
   0x1   :  { %9 = vsyncpa [#allocation6], 0  ;;  %s28_s14 = sshll.u32 %s357_s1, 4  ;;  %s29_s14 = int_to_ptr.hbm [resolvable:$true] %s28_s14 }
   0x2   :  { %10 = vsyncpa [#allocation4], 0  ;;  %s304_s15 = smov [#allocation5]   ;;  %s15_s19 = sshll.u32 %s356_s0, 4  ;;  %s16_s19 = int_to_ptr.hbm [resolvable:$true] %s15_s19 }
   0x3   :  { %s30_s16 = sshll.u32 %s304_s15, 4  ;;  %s305_s20 = smov 384   ;;  %s31_s16 = int_to_ptr.vmem [resolvable:$true] %s30_s16 }
   0x4   :  { %s306_s21 = smov 24   ;;  %s307_s22 = smov [#allocation2]  }
   0x5   :  { %36 = dma.hbm_to_vmem [thread:$0]  %s29_s14, 1536, %s31_s16, [#allocation6], %s305_s20, %s305_s20, %s306_s21  }
   0x6   :  { %s17_s23 = sshll.u32 %s307_s22, 4  ;;  %s308_s1 = smov 128   ;;  %s18_s23 = int_to_ptr.vmem [resolvable:$true] %s17_s23 }
   0x7   :  { %s309_s24 = smov 8   ;;  %s42_s27 = sshll.u32 %s358_s2, 4  ;;  %s43_s27 = int_to_ptr.hbm [resolvable:$true] %s42_s27 }
   0x8   :  { %23 = dma.hbm_to_vmem [thread:$0]  %s16_s19, 256, %s18_s23, [#allocation3], %s308_s1, %s308_s1, %s309_s24  }
   0x9   :  { %s310_s28 = smov [#allocation7]  }
   0xa   :  { %s44_s0 = sshll.u32 %s310_s28, 4  ;;  %s45_s0 = int_to_ptr.vmem [resolvable:$true] %s44_s0 }
   0xb   :  { %47 = dma.hbm_to_vmem [thread:$0]  %s43_s27, 48, %s45_s0, [#allocation6]  }
   0xc   :  { %298 = dma.done.wait [#allocation3], 256  }
   0xd   :  { %299 = vsyncadd [#allocation3], 4294967040 }
   0xe   :  { %300 = dma.done.wait [#allocation6], 1584  }
   0xf   :  { %301 = vsyncadd [#allocation6], 4294965712  ;;  %v73_v0 = vld [vmem:[#allocation5 + $0x58] sm:$0xff]  ;;  %v70_v1 = vld [vmem:[#allocation5 + $0x40] sm:$0xff]  ;;  %vm82_vm0 = vcmask 261120   ;;  %s311_s2 = smov [#allocation8]  }
  0x10   :  { %147 = vmatpush.msra.mxu2 %v73_v0  ;;  %v67_v2 = vld [vmem:[#allocation5 + $0x28] sm:$0xff]  ;;  %v72_v3 = vld [vmem:[#allocation5 + $0x50] sm:$0xff]  ;;  %v69_v5 = vld [vmem:[#allocation5 + $0x38] sm:$0xff]  ;;  %s168_s29 = sshll.u32 %s311_s2, 4  ;;  %s170_s5 = sshll.u32 %s359_s3, 4  ;;  %s169_s29 = int_to_ptr.vmem [resolvable:$true] %s168_s29  ;;  %s171_s5 = int_to_ptr.hbm [resolvable:$true] %s170_s5 }
  0x11   :  { %124 = vmatpush.msra.mxu1 %v72_v3  ;;  %v71_v4 = vld [vmem:[#allocation5 + $0x48] sm:$0xff]  ;;  %v68_v6 = vld [vmem:[#allocation5 + $0x30] sm:$0xff]  ;;  %v66_v7 = vld [vmem:[#allocation5 + $0x20] sm:$0xff] }
  0x12   :  { %148 = vmatpush.msra.mxu2 %v70_v1  ;;  %190 = vmatpush.msra.mxu3 %v71_v4  ;;  %v64_v8 = vld [vmem:[#allocation5 + $0x10] sm:$0xff]  ;;  %v65_v9 = vld [vmem:[#allocation5 + $0x18] sm:$0xff]  ;;  %v63_v11 = vld [vmem:[#allocation5 + $0x8] sm:$0xff] }
  0x13   :  { %125 = vmatpush.msra.mxu1 %v69_v5  ;;  %101 = vmatpush.msra.mxu0 %v71_v4  ;;  %v60_v10 = vld [vmem:[#allocation2] sm:$0xff]  ;;  %v62_v12 = vld [vmem:[#allocation5] sm:$0xff]  ;;  %v61_v13 = vld [vmem:[#allocation2 + $0x8] sm:$0xff] }
  0x14   :  { %149 = vmatpush.msra.mxu2 %v67_v2  ;;  %191 = vmatpush.msra.mxu3 %v68_v6  ;;  %v74_v14 = vld [vmem:[#allocation7] sm:$0x7] }
  0x15   :  { %126 = vmatpush.msra.mxu1 %v66_v7  ;;  %102 = vmatpush.msra.mxu0 %v68_v6  ;;  %v77_v15 = vperm.slane %v74_v14, 1  ;;  %v76_v18 = vperm.slane %v74_v14, 0  ;;  %v78_v19 = vperm.slane %v74_v14, 2 }
  0x16   :  { %150 = vmatpush.msra.mxu2 %v64_v8  ;;  %192 = vmatpush.msra.mxu3 %v65_v9 }
  0x17   :  { %188 = vmatmul.msk.f32.vlgmr.msra.gmra.mxu2 %vm82_vm0, %v60_v10  ;;  %127 = vmatpush.msra.mxu1 %v63_v11 }
  0x18   :  { %186 = vmatmul.msk.f32.vlgmr.msra.gmra.mxu1 %vm82_vm0, %v60_v10  ;;  %193 = vmatpush.msra.mxu3 %v62_v12 }
  0x19   :  { %185 = vmatmul.msk.f32.vlgmr.msra.gmra.mxu3 %vm82_vm0, %v61_v13  ;;  %103 = vmatpush.msra.mxu0 %v65_v9 }
  0x1b   :  { %104 = vmatpush.msra.mxu0 %v62_v12 }
  0x1c   :  { %184 = vmatmul.msk.f32.vlgmr.msra.gmra.mxu0 %vm82_vm0, %v60_v10 }
  0x1f   :  { %189 = vmatmul.msk.f32.gmra.mxu2 %vm82_vm0, %v61_v13 }
  0x20   :  { %187 = vmatmul.msk.f32.gmra.mxu1 %vm82_vm0, %v61_v13 }
  0x95   :  { %v129_v16 = vpop.f32.mrf.mxu1 }
  0x96   :  { %v130_v17 = vadd.f32 %v129_v16, %v77_v15 }
  0x98   :  { %159 = vst [vmem:[#allocation8 + $0x8] sm:$0xff] %v130_v17 }
  0x99   :  { %v106_v20 = vpop.f32.mrf.mxu0 }
  0x9a   :  { %v152_v21 = vpop.f32.mrf.mxu2  ;;  %v107_v22 = vadd.f32 %v106_v20, %v76_v18 }
  0x9b   :  { %v153_v23 = vadd.f32 %v152_v21, %v78_v19 }
  0x9c   :  { %158 = vst [vmem:[#allocation8] sm:$0xff] %v107_v22  ;;  %v109_v24 = vpop.f32.mrf.mxu3 }
  0x9d   :  { %160 = vst [vmem:[#allocation8 + $0x10] sm:$0xff] %v153_v23  ;;  %v110_v25 = vadd.f32 %v109_v24, %v76_v18  ;;  %v132_v26 = vpop.f32.mrf.mxu1 }
  0x9e   :  { %v133_v27 = vadd.f32 %v132_v26, %v77_v15 }
  0x9f   :  { %161 = vst [vmem:[#allocation8 + $0x18] sm:$0xff] %v110_v25 }
  0xa0   :  { %162 = vst [vmem:[#allocation8 + $0x20] sm:$0xff] %v133_v27 }
  0xa2   :  { %v155_v28 = vpop.f32.mrf.mxu2 }
  0xa3   :  { %v156_v29 = vadd.f32 %v155_v28, %v78_v19 }
  0xa5   :  { %163 = vst [vmem:[#allocation8 + $0x28] sm:$0xff] %v156_v29 }
  0xa6   :  { %176 = dma.vmem_to_hbm [thread:$0]  %s169_s29, 768, %s171_s5, [#allocation4], %s305_s20, %s305_s20, %s306_s21  }
  0xa7   :  { %302 = dma.done.wait [#allocation4], 768  }
  0xa8   :  { %303 = vsyncadd [#allocation4], 4294966528 }
  0xa9   :  { %181 = vsyncpa [#allocation3], 1 }
  0xaa   :  { %182 = vsyncpa [#allocation6], 1 }
  0xab   :  { %183 = vsyncpa [#allocation4], 1 }

</bundles_post_ra>
